<compile_context>
chip_gen: v6e
topology: v6e:2x2x1
jax: 0.10.0
libtpu: 0.0.40
codegen_flags: <defaults>
</compile_context>

<pallas_src>
import functools

import jax
import jax.numpy as jnp
from jax import lax
from jax.experimental import pallas as pl
from jax.experimental.pallas import tpu as pltpu


def _round_up(x, m):
    return ((x + m - 1) // m) * m


def _token_merger_kernel(idx_ref, s_ref, tok_ref, o_ref):
    # idx_ref: VMEM (TB, K) int32   selected token indices (duplicates allowed)
    # s_ref  : VMEM (TB, N)         per-token scores
    # tok_ref: VMEM (TB, N, D)      tokens (upstream dtype, e.g. bf16/f32)
    # o_ref  : VMEM (TB, D)         merged tokens (lane/sublane-dense slab)
    TB, N, _ = tok_ref.shape
    K = idx_ref.shape[1]

    idx = idx_ref[...]                                          # (TB, K)
    row_ids = lax.broadcasted_iota(jnp.int32, (TB, N, K), 1)    # (TB, N, K)
    # Per-row selection multiplicity -> preserves PyTorch gather semantics
    # even when idx contains duplicate entries.
    counts = jnp.sum((row_ids == idx[:, None, :]).astype(jnp.float32),
                     axis=2)                                    # (TB, N)
    w = counts * s_ref[...].astype(jnp.float32)                 # (TB, N)

    tok = tok_ref[...].astype(jnp.float32)                      # (TB, N, D)
    acc = jnp.sum(tok * w[:, :, None], axis=1)                  # (TB, D)
    ssum = jnp.sum(w, axis=1, keepdims=True)                    # (TB, 1)

    # Exact division (memory-bound kernel -> the divide is free); matches the
    # PyTorch reference more closely than an approx EUP reciprocal.
    o_ref[...] = (acc / (ssum + 1e-6)).astype(o_ref.dtype)


@functools.partial(jax.jit, static_argnames=("tb",))
def token_merger_batched(tokens, s, idx, *, tb=512):
    """Batched TokenMerger: (B, N, D), (B, N), (B, K) -> (B, 1, D)."""
    B, N, D = tokens.shape
    K = idx.shape[-1]

    if idx.dtype != jnp.int32:
        idx = idx.astype(jnp.int32)

    # Per-block batch size: multiple of 16 (safe sublane alignment for f32 and
    # bf16 blocks), capped at the requested tb and at the (rounded-up) batch.
    TB = min(_round_up(tb, 16), _round_up(B, 16))
    B_pad = _round_up(B, TB)
    if B_pad != B:
        pad = B_pad - B
        tokens = jnp.pad(tokens, ((0, pad), (0, 0), (0, 0)))
        s = jnp.pad(s, ((0, pad), (0, 0)))
        idx = jnp.pad(idx, ((0, pad), (0, 0)))

    tok_isz = jnp.dtype(tokens.dtype).itemsize
    s_isz = jnp.dtype(s.dtype).itemsize

    # Double-buffered VMEM footprint of one grid step; raise the scoped-VMEM
    # limit only when the default (16 MiB v5e / 32 MiB v6e,v7x) is too small.
    vmem_need = 2 * (TB * N * D * tok_isz + TB * N * s_isz
                     + TB * K * 4 + TB * D * tok_isz)
    compiler_kwargs = dict(dimension_semantics=("parallel",))
    if vmem_need > 12 * 1024 * 1024:
        compiler_kwargs["vmem_limit_bytes"] = min(vmem_need + (8 << 20), 60 << 20)

    cost = pl.CostEstimate(
        flops=3 * B_pad * N * D + B_pad * N * K,
        transcendentals=B_pad,
        bytes_accessed=B_pad * N * D * tok_isz + B_pad * D * tok_isz
        + B_pad * N * s_isz + B_pad * K * 4,
    )

    out = pl.pallas_call(
        _token_merger_kernel,
        out_shape=jax.ShapeDtypeStruct((B_pad, D), tokens.dtype),
        grid=(B_pad // TB,),
        in_specs=[
            pl.BlockSpec((TB, K), lambda b: (b, 0)),        # idx    -> (TB, K)
            pl.BlockSpec((TB, N), lambda b: (b, 0)),        # s      -> (TB, N)
            pl.BlockSpec((TB, N, D), lambda b: (b, 0, 0)),  # tokens -> (TB, N, D)
        ],
        out_specs=pl.BlockSpec((TB, D), lambda b: (b, 0)),  # out    -> (TB, D)
        compiler_params=pltpu.CompilerParams(**compiler_kwargs),
        cost_estimate=cost,
    )(idx, s, tokens)

    # Lane-dense (B, D) slab out of the kernel; restore the module's (1, D)
    # per-sample shape in the wrapper.
    return out[:B].reshape(B, 1, D)


def token_merger_ref(tokens, s, idx):
    """Pure-JAX reference of TokenMerger.forward."""
    s_sel = s[idx]
    tok_sel = tokens[idx]
    z = tok_sel * s_sel[:, None]
    z_s = z.sum(0) / (s_sel.sum(0) + 1e-6)
    return z_s[None, :]


def token_merger(tokens, s, idx):
    """Single-sample forward: (N, D), (N,), (K,) -> (1, D).

    Per the perf review a kernel launch is never worth it for one ~8 KiB
    sample; callers with batches should use token_merger_batched.
    """
    return token_merger_ref(tokens, s, idx)


if __name__ == "__main__":
    key = jax.random.PRNGKey(0)
    k_tok, k_s, k_idx = jax.random.split(key, 3)

    B, N, D, K = 40, 16, 128, 6   # batch, tokens, hidden, selected tokens
    tokens = jax.random.normal(k_tok, (B, N, D), dtype=jnp.float32)
    s = jax.random.uniform(k_s, (B, N), dtype=jnp.float32)
    # Random indices; duplicates allowed (count-based mask handles them).
    idx = jax.random.randint(k_idx, (B, K), 0, N, dtype=jnp.int32)

    ref = jax.vmap(token_merger_ref)(tokens, s, idx)            # (B, 1, D)

    # f32 path; tb=16 -> TB=16, B_pad=48, grid=(3,) exercises padding +
    # multi-step pipeline at these tiny test shapes.
    out_f32 = jax.block_until_ready(token_merger_batched(tokens, s, idx, tb=16))
    assert out_f32.shape == (B, 1, D)
    assert jnp.allclose(out_f32, ref, atol=1e-3, rtol=1e-3), "f32 mismatch"

    # bf16 tokens stay bf16 through HBM; upcast happens inside the kernel.
    out_bf16 = jax.block_until_ready(
        token_merger_batched(tokens.astype(jnp.bfloat16), s, idx, tb=16))
    assert out_bf16.dtype == jnp.bfloat16
    assert jnp.allclose(out_bf16.astype(jnp.float32), ref, atol=3e-2, rtol=3e-2), \
        "bf16 mismatch"

    # Single-sample path (the original module's forward signature; pure JAX).
    out1 = jax.block_until_ready(token_merger(tokens[0], s[0], idx[0]))
    assert out1.shape == (1, D)
    assert jnp.allclose(out1, ref[0], atol=1e-3, rtol=1e-3), "single mismatch"

    print("KERNEL_OK")
</pallas_src>

<mosaic_0001>
module attributes {stable_mosaic.version = 11 : i64} {
  func.func @_token_merger_kernel(%arg0: i32, %arg1: memref<16x6xi32, #tpu.memory_space<vmem>>, %arg2: memref<16x16xf32, #tpu.memory_space<vmem>>, %arg3: memref<16x16x128xf32, #tpu.memory_space<vmem>>, %arg4: memref<16x128xf32, #tpu.memory_space<vmem>>) attributes {dimension_semantics = [#tpu.dimension_semantics<parallel>], iteration_bounds = array<i64: 3>, scalar_prefetch = 0 : i64, scratch_operands = 0 : i64, tpu.core_type = #tpu.core_type<tc>, window_params = [{transform_indices = @transform_0, window_bounds = array<i64: 16, 6>}, {transform_indices = @transform_1, window_bounds = array<i64: 16, 16>}, {transform_indices = @transform_2, window_bounds = array<i64: 16, 16, 128>}, {transform_indices = @transform_3, window_bounds = array<i64: 16, 128>}]} {
    %c0 = arith.constant 0 : index
    %c0_0 = arith.constant 0 : index
    %0 = vector.load %arg1[%c0, %c0_0] : memref<16x6xi32, #tpu.memory_space<vmem>>, vector<16x6xi32>
    %1 = tpu.iota {dimensions = array<i32: 1>} : vector<16x16x6xi32>
    %2 = vector.shape_cast %0 : vector<16x6xi32> to vector<16x1x6xi32>
    %3 = vector.broadcast %2 : vector<16x1x6xi32> to vector<16x16x6xi32>
    %4 = arith.cmpi eq, %1, %3 : vector<16x16x6xi32>
    %5 = arith.extui %4 : vector<16x16x6xi1> to vector<16x16x6xi32>
    %6 = arith.sitofp %5 : vector<16x16x6xi32> to vector<16x16x6xf32>
    %cst = arith.constant dense<0.000000e+00> : vector<16x16xf32>
    %7 = vector.multi_reduction <add>, %6, %cst [2] : vector<16x16x6xf32> to vector<16x16xf32>
    %c0_1 = arith.constant 0 : index
    %c0_2 = arith.constant 0 : index
    %8 = vector.load %arg2[%c0_1, %c0_2] : memref<16x16xf32, #tpu.memory_space<vmem>>, vector<16x16xf32>
    %9 = arith.mulf %7, %8 : vector<16x16xf32>
    %c0_3 = arith.constant 0 : index
    %c0_4 = arith.constant 0 : index
    %c0_5 = arith.constant 0 : index
    %10 = vector.load %arg3[%c0_3, %c0_4, %c0_5] : memref<16x16x128xf32, #tpu.memory_space<vmem>>, vector<16x16x128xf32>
    %11 = vector.shape_cast %9 : vector<16x16xf32> to vector<16x16x1xf32>
    %12 = vector.broadcast %11 : vector<16x16x1xf32> to vector<16x16x128xf32>
    %13 = arith.mulf %10, %12 : vector<16x16x128xf32>
    %cst_6 = arith.constant dense<0.000000e+00> : vector<16x128xf32>
    %14 = vector.multi_reduction <add>, %13, %cst_6 [1] : vector<16x16x128xf32> to vector<16x128xf32>
    %cst_7 = arith.constant dense<0.000000e+00> : vector<16xf32>
    %15 = vector.multi_reduction <add>, %9, %cst_7 [1] : vector<16x16xf32> to vector<16xf32>
    %16 = vector.shape_cast %15 : vector<16xf32> to vector<16x1xf32>
    %cst_8 = arith.constant 9.99999997E-7 : f32
    %17 = vector.broadcast %cst_8 : f32 to vector<16x1xf32>
    %18 = arith.addf %16, %17 : vector<16x1xf32>
    %19 = vector.broadcast %18 : vector<16x1xf32> to vector<16x128xf32>
    %20 = arith.divf %14, %19 : vector<16x128xf32>
    %c0_9 = arith.constant 0 : index
    %c0_10 = arith.constant 0 : index
    %21 = vector.load %arg4[%c0_9, %c0_10] : memref<16x128xf32, #tpu.memory_space<vmem>>, vector<16x128xf32>
    tpu.vector_store %arg4[%c0_9, %c0_10], %20 {strides = array<i32>} : memref<16x128xf32, #tpu.memory_space<vmem>>, vector<16x128xf32>,
    return
  }
  func.func @transform_0(%arg0: i32) -> (i32, i32) {
    %c0_i32 = arith.constant 0 : i32
    %c0_i32_0 = arith.constant 0 : i32
    return %arg0, %c0_i32 : i32, i32
  }
  func.func @transform_1(%arg0: i32) -> (i32, i32) {
    %c0_i32 = arith.constant 0 : i32
    %c0_i32_0 = arith.constant 0 : i32
    return %arg0, %c0_i32 : i32, i32
  }
  func.func @transform_2(%arg0: i32) -> (i32, i32, i32) {
    %c0_i32 = arith.constant 0 : i32
    %c0_i32_0 = arith.constant 0 : i32
    %c0_i32_1 = arith.constant 0 : i32
    return %arg0, %c0_i32, %c0_i32_0 : i32, i32, i32
  }
  func.func @transform_3(%arg0: i32) -> (i32, i32) {
    %c0_i32 = arith.constant 0 : i32
    %c0_i32_0 = arith.constant 0 : i32
    return %arg0, %c0_i32 : i32, i32
  }
}

</mosaic_0001>

<bundles_post_ra>
// kernel: token_merger_batched.1
= control target key start
LH: loop header
LB: loop body
LE: loop exit
PB: predicated region body
PF: predicated region fallthrough
CT: control target
= control target key end

     0   :  { %s1660_s12 = smov 0   ;;  %s2235_s0 = inlined_call_operand.vmem [shape: s32[48,6], index: 0, kind: input, shape index: {}]   ;;  %s2236_s1 = inlined_call_operand.vmem [shape: f32[48,16], index: 1, kind: input, shape index: {}]   ;;  %s2237_s2 = inlined_call_operand.vmem [shape: f32[48,16,128], index: 2, kind: input, shape index: {}]   ;;  %s2238_s3 = inlined_call_operand.vmem [shape: f32[48,128], index: 3, kind: output, shape index: {}]  }
   0x1 LB: > { %s1533_s13 = sadd.s32 4294967295, %s1635_s12   ;;  %p1537_p0 = scmp.ge.s32.totalorder %s1635_s12, 1  ;;  %s1635_s12 = sphi %s1660_s12, %s13_s12  }
   0x2   : > { %p161_p1 = scmp.lt.s32.totalorder %s1635_s12, 4 }
   0x4   : > { %p162_p2 = pnand %p1537_p0, %p161_p1 }
   0x5   : > { %s1538_s14 = sshll.u32 (!%p162_p2), %s1533_s13, 1  ;;  %s1542_s22 = sshll.u32 (!%p162_p2), %s1533_s13, 4 }
   0x6   : > { %165 = sbr.rel (%p162_p2) target bundleno = 602 (0x25a), region = 32  ;;  %p197_p3 = scmp.lt.s32.totalorder (!%p162_p2), %s1538_s14, 5 }
   0x7   : > { %p209_p4 = scmp.lt.s32.totalorder (!%p162_p2), %s1542_s22, 47 }
   0xb   : > { %v223_v0 = vlaneseq  ;;  %v1637_v1 = vmov 1966171168   ;;  %s2240_s14 = smov (!%p197_p3, %s1538_s14), 5  ;;  %vm484_vm0 = vcmask 48128   ;;  %v1638_v24 = vmov 0.0   ;;  %s2242_s22 = smov (!%p209_p4, %s1542_s22), 47 }
   0xc   : > { %v228_v2 = vunpack.c.l.s4 %v1637_v1  ;;  %s1673_s15 = sshll.u32 %s2240_s14, 3  ;;  %s1581_s23 = sshll.u32 %s2242_s22, 4 }
   0xd   : > { %v1671_v3 = vshrl.u32 %v223_v0, 7  ;;  %s1682_s18 = scalar_lea.vmem %s2235_s0, %s1673_s15  ;;  %s206_s21 = scalar_lea.vmem %s2236_s1, %s1673_s15 }
   0xe   : > { %v229_v4 = vunpack.c.0.s8 %v228_v2  ;;  %v221_v7 = vld [vmem:[%s1682_s18] sm:$0xff]  ;;  %v1694_v9 = vld [vmem:[%s206_s21 + $0x8] sm:$0xff]  ;;  %s1916_s26 = scalar_lea.vmem %s2237_s2, %s1581_s23  ;;  %s2216_s29 = scalar_lea.vmem %s2238_s3, %s1673_s15 }
   0xf   : > { %v1689_v6 = vsub.s32 0, %v1671_v3  ;;  %v1692_v8 = vld [vmem:[%s206_s21] sm:$0xff]  ;;  %v226_v11 = vcombine.high %v221_v7, %v221_v7  ;;  %v1707_v16 = vadd.s32 8, %v1671_v3  ;;  %v222_v45 = vld [vmem:[%s1682_s18 + $0x8] sm:$0xff] }
  0x10   : > { %v1676_v5 = vsub.s32 %v229_v4, %v1671_v3 }
  0x11   : > { %v1699_v12 = vrot.slane %v1692_v8, %v1689_v6  ;;  %v1703_v13 = vrot.slane %v1694_v9, %v1689_v6 }
  0x12   : > { %v233_v10 = vrot.slane %v221_v7, %v1676_v5  ;;  %v240_v17 = vrot.slane %v226_v11, %v1676_v5  ;;  %v282_v49 = vrot.slane %v222_v45, %v1676_v5  ;;  %v275_v11 = vcombine.high %v222_v45, %v222_v45 }
  0x14   : > { %v249_v14 = vrot.slane %v233_v10, %v1676_v5  ;;  %v241_v15 = vcombine.high %v233_v10, %v233_v10  ;;  %v256_v21 = vrot.slane %v240_v17, %v1676_v5  ;;  %v242_v28 = vcombine.high %v240_v17, %v240_v17 }
  0x15   : > { %v298_v56 = vrot.slane %v282_v49, %v1676_v5  ;;  %v290_v59 = vcombine.high %v282_v49, %v282_v49 }
  0x16   : > { %v327_v18 = vrot.slane %v249_v14, %v1689_v6  ;;  %v263_v19 = vrot.slane %v241_v15, %v1676_v5  ;;  %v271_v20 = vcombine.high %v249_v14, %v249_v14  ;;  %v343_v27 = vrot.slane %v256_v21, %v1689_v6 }
  0x17   : > { %v270_v38 = vrot.slane %v242_v28, %v1676_v5  ;;  %v272_v44 = vcombine.high %v256_v21, %v256_v21  ;;  %v359_v1 = vrot.slane %v298_v56, %v1689_v6  ;;  %v312_v2 = vrot.slane %v290_v59, %v1676_v5 }
  0x18   : > { %vm388_vm1 = vcmp.eq.s32.totalorder %v1671_v3, %v327_v18  ;;  %v331_v22 = vrot.slane %v263_v19, %v1689_v6  ;;  %vm389_vm2 = vcmp.eq.s32.totalorder %v1707_v16, %v327_v18  ;;  %v335_v23 = vrot.slane %v271_v20, %v1689_v6 }
  0x19   : > { %v1547_v25 = vsel %vm388_vm1, 1.0, %v1638_v24  ;;  %v1548_v26 = vsel %vm389_vm2, 1.0, %v1638_v24  ;;  %v273_v30 = vcombine.high %v263_v19, %v263_v19  ;;  %vm396_vm7 = vcmp.eq.s32.totalorder %v1671_v3, %v343_v27 }
  0x1a   : > { %v485_v29 = vsel %vm484_vm0, %v1547_v25, 0.0  ;;  %vm390_vm3 = vcmp.eq.s32.totalorder %v1671_v3, %v331_v22  ;;  %vm391_vm4 = vcmp.eq.s32.totalorder %v1707_v16, %v331_v22  ;;  %vm392_vm5 = vcmp.eq.s32.totalorder %v1671_v3, %v335_v23 }
  0x1b   : > { %486 = vadd.xlane.f32.xlu0 %v485_v29  ;;  %v1549_v31 = vsel %vm390_vm3, 1.0, %v1638_v24  ;;  %v1550_v32 = vsel %vm391_vm4, 1.0, %v1638_v24  ;;  %v488_v34 = vsel %vm484_vm0, %v1548_v26, 0.0  ;;  %vm393_vm6 = vcmp.eq.s32.totalorder %v1707_v16, %v335_v23 }
  0x1c   : > { %v491_v33 = vsel %vm484_vm0, %v1549_v31, 0.0  ;;  %v1551_v35 = vsel %vm392_vm5, 1.0, %v1638_v24  ;;  %v494_v36 = vsel %vm484_vm0, %v1550_v32, 0.0  ;;  %v339_v37 = vrot.slane %v273_v30, %v1689_v6 }
  0x1d   : > { %492 = vadd.xlane.f32.xlu1 %v491_v33  ;;  %v1552_v39 = vsel %vm393_vm6, 1.0, %v1638_v24  ;;  %v497_v40 = vsel %vm484_vm0, %v1551_v35, 0.0  ;;  %vm397_vm8 = vcmp.eq.s32.totalorder %v1707_v16, %v343_v27  ;;  %v1555_v41 = vsel %vm396_vm7, 1.0, %v1638_v24 }
  0x1e   : > { %v500_v42 = vsel %vm484_vm0, %v1552_v39, 0.0  ;;  %vm394_vm9 = vcmp.eq.s32.totalorder %v1671_v3, %v339_v37  ;;  %v347_v43 = vrot.slane %v270_v38, %v1689_v6  ;;  %v1556_v46 = vsel %vm397_vm8, 1.0, %v1638_v24 }
  0x1f   : > { %489 = vadd.xlane.f32.xlu0 %v488_v34  ;;  %v509_v47 = vsel %vm484_vm0, %v1555_v41, 0.0  ;;  %vm395_vm10 = vcmp.eq.s32.totalorder %v1707_v16, %v339_v37  ;;  %v1553_v48 = vsel %vm394_vm9, 1.0, %v1638_v24  ;;  %v512_v50 = vsel %vm484_vm0, %v1556_v46, 0.0 }
  0x20   : > { %vm398_vm11 = vcmp.eq.s32.totalorder %v1671_v3, %v347_v43  ;;  %v351_v51 = vrot.slane %v272_v44, %v1689_v6  ;;  %v274_v52 = vcombine.high %v270_v38, %v270_v38  ;;  %v1554_v53 = vsel %vm395_vm10, 1.0, %v1638_v24 }
  0x21   : > { %495 = vadd.xlane.f32.xlu1 %v494_v36  ;;  %v503_v54 = vsel %vm484_vm0, %v1553_v48, 0.0  ;;  %vm399_vm12 = vcmp.eq.s32.totalorder %v1707_v16, %v347_v43  ;;  %v1557_v55 = vsel %vm398_vm11, 1.0, %v1638_v24  ;;  %v506_v57 = vsel %vm484_vm0, %v1554_v53, 0.0 }
  0x22   : > { %vm400_vm13 = vcmp.eq.s32.totalorder %v1671_v3, %v351_v51  ;;  %v355_v58 = vrot.slane %v274_v52, %v1689_v6  ;;  %v1558_v60 = vsel %vm399_vm12, 1.0, %v1638_v24  ;;  %v515_v61 = vsel %vm484_vm0, %v1557_v55, 0.0 }
  0x23   : > { %498 = vadd.xlane.f32.xlu0 %v497_v40  ;;  %vm401_vm14 = vcmp.eq.s32.totalorder %v1707_v16, %v351_v51  ;;  %v1559_v62 = vsel %vm400_vm13, 1.0, %v1638_v24  ;;  %v518_v63 = vsel %vm484_vm0, %v1558_v60, 0.0  ;;  %vm404_vm2 = vcmp.eq.s32.totalorder %v1671_v3, %v359_v1 }
  0x24   : > { %vm402_vm15 = vcmp.eq.s32.totalorder %v1671_v3, %v355_v58  ;;  %v1560_v4 = vsel %vm401_vm14, 1.0, %v1638_v24  ;;  %v521_v7 = vsel %vm484_vm0, %v1559_v62, 0.0  ;;  %vm403_vm1 = vcmp.eq.s32.totalorder %v1707_v16, %v355_v58 }
  0x25   : > { %501 = vadd.xlane.f32.xlu1 %v500_v42  ;;  %v1561_v10 = vsel %vm402_vm15, 1.0, %v1638_v24  ;;  %v524_v14 = vsel %vm484_vm0, %v1560_v4, 0.0  ;;  %v363_v15 = vrot.slane %v312_v2, %v1689_v6  ;;  %v320_v17 = vcombine.high %v298_v56, %v298_v56 }
  0x26   : > { %v1562_v18 = vsel %vm403_vm1, 1.0, %v1638_v24  ;;  %v527_v19 = vsel %vm484_vm0, %v1561_v10, 0.0  ;;  %vm405_vm3 = vcmp.eq.s32.totalorder %v1707_v16, %v359_v1  ;;  %v1563_v20 = vsel %vm404_vm2, 1.0, %v1638_v24 }
  0x27   : > { %510 = vadd.xlane.f32.xlu0 %v509_v47  ;;  %v289_v21 = vrot.slane %v275_v11, %v1676_v5  ;;  %v530_v22 = vsel %vm484_vm0, %v1562_v18, 0.0  ;;  %vm406_vm4 = vcmp.eq.s32.totalorder %v1671_v3, %v363_v15  ;;  %v367_v23 = vrot.slane %v320_v17, %v1689_v6 }
  0x28   : > { %v322_v25 = vcombine.high %v312_v2, %v312_v2  ;;  %v1564_v26 = vsel %vm405_vm3, 1.0, %v1638_v24  ;;  %v533_v27 = vsel %vm484_vm0, %v1563_v20, 0.0  ;;  %vm407_vm5 = vcmp.eq.s32.totalorder %v1707_v16, %v363_v15 }
  0x29   : > { %513 = vadd.xlane.f32.xlu1 %v512_v50  ;;  %v1565_v28 = vsel %vm406_vm4, 1.0, %v1638_v24  ;;  %v305_v29 = vrot.slane %v289_v21, %v1676_v5  ;;  %v536_v30 = vsel %vm484_vm0, %v1564_v26, 0.0  ;;  %vm408_vm6 = vcmp.eq.s32.totalorder %v1671_v3, %v367_v23 }
  0x2a   : > { %v371_v31 = vrot.slane %v322_v25, %v1689_v6  ;;  %v291_v32 = vcombine.high %v289_v21, %v289_v21  ;;  %v1566_v33 = vsel %vm407_vm5, 1.0, %v1638_v24  ;;  %v539_v34 = vsel %vm484_vm0, %v1565_v28, 0.0 }
  0x2b   : > { %504 = vadd.xlane.f32.xlu0 %v503_v54  ;;  %vm409_vm7 = vcmp.eq.s32.totalorder %v1707_v16, %v367_v23  ;;  %v1567_v35 = vsel %vm408_vm6, 1.0, %v1638_v24  ;;  %v542_v36 = vsel %vm484_vm0, %v1566_v33, 0.0  ;;  %v375_v37 = vrot.slane %v305_v29, %v1689_v6 }
  0x2c   : > { %vm410_vm8 = vcmp.eq.s32.totalorder %v1671_v3, %v371_v31  ;;  %v319_v38 = vrot.slane %v291_v32, %v1676_v5  ;;  %v1568_v39 = vsel %vm409_vm7, 1.0, %v1638_v24  ;;  %v545_v40 = vsel %vm484_vm0, %v1567_v35, 0.0 }
  0x2d   : > { %507 = vadd.xlane.f32.xlu1 %v506_v57  ;;  %vm411_vm9 = vcmp.eq.s32.totalorder %v1707_v16, %v371_v31  ;;  %v1569_v41 = vsel %vm410_vm8, 1.0, %v1638_v24  ;;  %v548_v42 = vsel %vm484_vm0, %v1568_v39, 0.0  ;;  %vm412_vm10 = vcmp.eq.s32.totalorder %v1671_v3, %v375_v37 }
  0x2e   : > { %v379_v43 = vrot.slane %v319_v38, %v1689_v6  ;;  %v321_v44 = vcombine.high %v305_v29, %v305_v29  ;;  %v1570_v5 = vsel %vm411_vm9, 1.0, %v1638_v24  ;;  %v551_v45 = vsel %vm484_vm0, %v1569_v41, 0.0 }
  0x2f   : > { %516 = vadd.xlane.f32.xlu0 %v515_v61  ;;  %vm413_vm11 = vcmp.eq.s32.totalorder %v1707_v16, %v375_v37  ;;  %v1571_v46 = vsel %vm412_vm10, 1.0, %v1638_v24  ;;  %v554_v47 = vsel %vm484_vm0, %v1570_v5, 0.0  ;;  %v323_v49 = vcombine.high %v319_v38, %v319_v38 }
  0x30   : > { %vm414_vm12 = vcmp.eq.s32.totalorder %v1671_v3, %v379_v43  ;;  %v383_v48 = vrot.slane %v321_v44, %v1689_v6  ;;  %v1572_v50 = vsel %vm413_vm11, 1.0, %v1638_v24  ;;  %v557_v51 = vsel %vm484_vm0, %v1571_v46, 0.0 }
  0x31   : > { %519 = vadd.xlane.f32.xlu1 %v518_v63  ;;  %vm415_vm13 = vcmp.eq.s32.totalorder %v1707_v16, %v379_v43  ;;  %v1573_v52 = vsel %vm414_vm12, 1.0, %v1638_v24  ;;  %v560_v53 = vsel %vm484_vm0, %v1572_v50, 0.0  ;;  %v387_v54 = vrot.slane %v323_v49, %v1689_v6 }
  0x32   : > { %vm416_vm14 = vcmp.eq.s32.totalorder %v1671_v3, %v383_v48  ;;  %v1574_v55 = vsel %vm415_vm13, 1.0, %v1638_v24  ;;  %v563_v56 = vsel %vm484_vm0, %v1573_v52, 0.0  ;;  %vm417_vm15 = vcmp.eq.s32.totalorder %v1707_v16, %v383_v48 }
  0x33   : > { %522 = vadd.xlane.f32.xlu0 %v521_v7  ;;  %v1575_v57 = vsel %vm416_vm14, 1.0, %v1638_v24  ;;  %v566_v58 = vsel %vm484_vm0, %v1574_v55, 0.0  ;;  %vm418_vm1 = vcmp.eq.s32.totalorder %v1671_v3, %v387_v54  ;;  %v1576_v59 = vsel %vm417_vm15, 1.0, %v1638_v24 }
  0x34   : > { %v569_v60 = vsel %vm484_vm0, %v1575_v57, 0.0  ;;  %vm419_vm2 = vcmp.eq.s32.totalorder %v1707_v16, %v387_v54  ;;  %v1577_v6 = vsel %vm418_vm1, 1.0, %v1638_v24  ;;  %v572_v61 = vsel %vm484_vm0, %v1576_v59, 0.0 }
  0x35   : > { %525 = vadd.xlane.f32.xlu1 %v524_v14  ;;  %v1578_v62 = vsel %vm419_vm2, 1.0, %v1638_v24  ;;  %v575_v63 = vsel %vm484_vm0, %v1577_v6, 0.0  ;;  %v598_v2 = vsub.s32 1, %v1671_v3  ;;  %v1639_v4 = vmov 0  }
  0x36   : > { %v578_v1 = vsel %vm484_vm0, %v1578_v62, 0.0  ;;  %1593 = vset.pattern.permute.xlu0 %v1639_v4  ;;  %1594 = vset.pattern.permute.xlu1 %v1639_v4  ;;  %v609_v16 = vsub.s32 2, %v1671_v3  ;;  %v620_v11 = vsub.s32 3, %v1671_v3  ;;  %v631_v15 = vsub.s32 4, %v1671_v3 }
  0x37   : > { %528 = vadd.xlane.f32.xlu0 %v527_v19  ;;  %v599_v7 = vrot.slane %v1692_v8, %v598_v2  ;;  %v687_v10 = vrot.slane %v1694_v9, %v598_v2  ;;  %v642_v19 = vsub.s32 5, %v1671_v3  ;;  %v653_v21 = vsub.s32 6, %v1671_v3 }
  0x38   : > { %v610_v24 = vrot.slane %v1692_v8, %v609_v16  ;;  %v621_v14 = vrot.slane %v1692_v8, %v620_v11  ;;  %v632_v17 = vrot.slane %v1692_v8, %v631_v15  ;;  %v709_v18 = vrot.slane %v1694_v9, %v620_v11 }
  0x39   : > { %531 = vadd.xlane.f32.xlu1 %v530_v22  ;;  %v643_v20 = vrot.slane %v1692_v8, %v642_v19  ;;  %v654_v22 = vrot.slane %v1692_v8, %v653_v21  ;;  %v731_v23 = vrot.slane %v1694_v9, %v642_v19  ;;  %v664_v25 = vsub.s32 7, %v1671_v3 }
  0x3a   : > { %vm1172_vm0 = vcmask 130112   ;;  %vm1309_vm3 = vcmask 1041409   ;;  %vm1311_vm4 = vcmask 1042434   ;;  %vm1313_vm5 = vcmask 1043459  }
  0x3b   : > { %534 = vadd.xlane.f32.xlu0 %v533_v27  ;;  %v665_v26 = vrot.slane %v1692_v8, %v664_v25  ;;  %v742_v27 = vrot.slane %v1694_v9, %v653_v21  ;;  %v753_v28 = vrot.slane %v1694_v9, %v664_v25  ;;  %vm1315_vm6 = vcmask 1044484  }
  0x3c   : > { %vm1317_vm7 = vcmask 1045509   ;;  %vm1319_vm8 = vcmask 1046534   ;;  %vm1321_vm9 = vcmask 1047559   ;;  %vm1332_vm10 = vcmask 130048  }
  0x3d   : > { %537 = vadd.xlane.f32.xlu1 %v536_v30 }
  0x3f   : > { %540 = vadd.xlane.f32.xlu0 %v539_v34 }
  0x41   : > { %543 = vadd.xlane.f32.xlu1 %v542_v36 }
  0x43   : > { %546 = vadd.xlane.f32.xlu0 %v545_v40 }
  0x45   : > { %549 = vadd.xlane.f32.xlu1 %v548_v42 }
  0x47   : > { %552 = vadd.xlane.f32.xlu0 %v551_v45 }
  0x49   : > { %555 = vadd.xlane.f32.xlu1 %v554_v47 }
  0x4b   : > { %558 = vadd.xlane.f32.xlu0 %v557_v51 }
  0x4d   : > { %561 = vadd.xlane.f32.xlu1 %v560_v53 }
  0x4f   : > { %564 = vadd.xlane.f32.xlu0 %v563_v56 }
  0x51   : > { %567 = vadd.xlane.f32.xlu1 %v566_v58 }
  0x53   : > { %570 = vadd.xlane.f32.xlu0 %v569_v60 }
  0x55   : > { %573 = vadd.xlane.f32.xlu1 %v572_v61 }
  0x57   : > { %576 = vadd.xlane.f32.xlu0 %v575_v63 }
  0x59   : > { %579 = vadd.xlane.f32.xlu1 %v578_v1 }
  0x6a   : > { %594 = vbcast.lane.b32.xlu1 %v1699_v12, 264 }
  0x6d   : > { %590 = vbcast.lane.b32.xlu0 %v1699_v12, 256  ;;  %v698_v12 = vrot.slane %v1694_v9, %v609_v16 }
  0x6e   : > { %601 = vbcast.lane.b32.xlu1 %v599_v7, 256 }
  0x71   : > { %612 = vbcast.lane.b32.xlu0 %v610_v24, 256 }
  0x72   : > { %605 = vbcast.lane.b32.xlu1 %v599_v7, 264 }
  0x75   : > { %678 = vbcast.lane.b32.xlu0 %v1703_v13, 256 }
  0x76   : > { %616 = vbcast.lane.b32.xlu1 %v610_v24, 264 }
  0x79   : > { %689 = vbcast.lane.b32.xlu0 %v687_v10, 256 }
  0x7a   : > { %682 = vbcast.lane.b32.xlu1 %v1703_v13, 264  ;;  %v720_v13 = vrot.slane %v1694_v9, %v631_v15 }
  0x7d   : > { %623 = vbcast.lane.b32.xlu0 %v621_v14, 256 }
  0x7e   : > { %693 = vbcast.lane.b32.xlu1 %v687_v10, 264 }
  0x81   : > { %700 = vbcast.lane.b32.xlu0 %v698_v12, 256 }
  0x82   : > { %627 = vbcast.lane.b32.xlu1 %v621_v14, 264 }
  0x85   : > { %634 = vbcast.lane.b32.xlu0 %v632_v17, 256 }
  0x86   : > { %704 = vbcast.lane.b32.xlu1 %v698_v12, 264 }
  0x89   : > { %711 = vbcast.lane.b32.xlu0 %v709_v18, 256 }
  0x8a   : > { %638 = vbcast.lane.b32.xlu1 %v632_v17, 264 }
  0x8d   : > { %645 = vbcast.lane.b32.xlu0 %v643_v20, 256 }
  0x8e   : > { %715 = vbcast.lane.b32.xlu1 %v709_v18, 264 }
  0x91   : > { %722 = vbcast.lane.b32.xlu0 %v720_v13, 256 }
  0x92   : > { %649 = vbcast.lane.b32.xlu1 %v643_v20, 264 }
  0x95   : > { %656 = vbcast.lane.b32.xlu0 %v654_v22, 256 }
  0x96   : > { %726 = vbcast.lane.b32.xlu1 %v720_v13, 264 }
  0x99   : > { %733 = vbcast.lane.b32.xlu0 %v731_v23, 256 }
  0x9a   : > { %660 = vbcast.lane.b32.xlu1 %v654_v22, 264 }
  0x9d   : > { %667 = vbcast.lane.b32.xlu0 %v665_v26, 256 }
  0x9e   : > { %737 = vbcast.lane.b32.xlu1 %v731_v23, 264 }
  0xa1   : > { %744 = vbcast.lane.b32.xlu0 %v742_v27, 256 }
  0xa2   : > { %671 = vbcast.lane.b32.xlu1 %v665_v26, 264 }
  0xa4   : > { %v487_v29 = vpop.xlane.xlu0 %486 }
  0xa5   : > { %755 = vbcast.lane.b32.xlu0 %v753_v28, 256 }
  0xa6   : > { %v493_v30 = vpop.xlane.xlu1 %492  ;;  %748 = vbcast.lane.b32.xlu1 %v742_v27, 264 }
  0xa8   : > { %v490_v31 = vpop.xlane.xlu0 %489 }
  0xaa   : > { %v496_v32 = vpop.xlane.xlu1 %495  ;;  %759 = vbcast.lane.b32.xlu1 %v753_v28, 264 }
  0xac   : > { %v499_v33 = vpop.xlane.xlu0 %498 }
  0xae   : > { %v502_v34 = vpop.xlane.xlu1 %501 }
  0xb0   : > { %v1857_v35 = vpop.xlane.xlu0 %510 }
  0xb2   : > { %v1859_v8 = vpop.xlane.xlu1 %513 }
  0xb4   : > { %v505_v36 = vpop.xlane.xlu0 %504 }
  0xb6   : > { %v1861_v37 = vpop.xlane.xlu1 %507 }
  0xb8   : > { %v1863_v38 = vpop.xlane.xlu0 %516 }
  0xba   : > { %v1865_v9 = vpop.xlane.xlu1 %519 }
  0xbc   : > { %v1867_v39 = vpop.xlane.xlu0 %522 }
  0xbe   : > { %v1869_v40 = vpop.xlane.xlu1 %525 }
  0xc0   : > { %v1871_v41 = vpop.xlane.xlu0 %528 }
  0xc2   : > { %v1873_v42 = vpop.xlane.xlu1 %531 }
  0xc4   : > { %v535_v43 = vpop.xlane.xlu0 %534 }
  0xc6   : > { %v538_v44 = vpop.xlane.xlu1 %537 }
  0xc8   : > { %v541_v5 = vpop.xlane.xlu0 %540 }
  0xca   : > { %v544_v45 = vpop.xlane.xlu1 %543 }
  0xcc   : > { %v547_v46 = vpop.xlane.xlu0 %546 }
  0xce   : > { %v550_v47 = vpop.xlane.xlu1 %549 }
  0xd0   : > { %v553_v48 = vpop.xlane.xlu0 %552 }
  0xd2   : > { %v1875_v49 = vpop.xlane.xlu1 %555 }
  0xd4   : > { %v1877_v50 = vpop.xlane.xlu0 %558 }
  0xd6   : > { %v1879_v51 = vpop.xlane.xlu1 %561 }
  0xd8   : > { %v1881_v52 = vpop.xlane.xlu0 %564 }
  0xda   : > { %v1883_v53 = vpop.xlane.xlu1 %567 }
  0xdc   : > { %v1885_v54 = vpop.xlane.xlu0 %570 }
  0xde   : > { %v1887_v55 = vpop.xlane.xlu1 %573 }
  0xe0   : > { %v1889_v56 = vpop.xlane.xlu0 %576 }
  0xe2   : > { %v1891_v57 = vpop.xlane.xlu1 %579 }
  0xe4   : > { %v591_v58 = vpop.permute.xlu0 %590 }
  0xe5   : > { %v793_v59 = vmul.f32 %v591_v58, %v487_v29 }
  0xe6   : > { %v595_v60 = vpop.permute.xlu1 %594 }
  0xe7   : > { %v794_v6 = vmul.f32 %v595_v60, %v490_v31  ;;  %859 = vperm.xlu0 %1593, %v793_v59  }
  0xe8   : > { %v613_v61 = vpop.permute.xlu0 %612 }
  0xe9   : > { %864 = vperm.xlu1 %1594, %v794_v6   ;;  %v797_v10 = vmul.f32 %v613_v61, %v499_v33 }
  0xea   : > { %v602_v62 = vpop.permute.xlu1 %601 }
  0xeb   : > { %v795_v16 = vmul.f32 %v602_v62, %v493_v30 }
  0xec   : > { %v679_v63 = vpop.permute.xlu0 %678 }
  0xed   : > { %v809_v1 = vmul.f32 %v679_v63, %v535_v43 }
  0xee   : > { %v606_v2 = vpop.permute.xlu1 %605 }
  0xef   : > { %939 = vperm.xlu1 %1594, %v809_v1   ;;  %v796_v18 = vmul.f32 %v606_v2, %v496_v32 }
  0xf0   : > { %v690_v4 = vpop.permute.xlu0 %689 }
  0xf1   : > { %v811_v15 = vmul.f32 %v690_v4, %v541_v5 }
  0xf2   : > { %v617_v7 = vpop.permute.xlu1 %616 }
  0xf3   : > { %869 = vperm.xlu1 %1594, %v795_v16   ;;  %v798_v21 = vmul.f32 %v617_v7, %v502_v34  ;;  %v841_v7 = vld [vmem:[%s1916_s26 + $0x80] sm:$0xff] }
  0xf4   : > { %v624_v24 = vpop.permute.xlu0 %623 }
  0xf5   : > { %v799_v20 = vmul.f32 %v624_v24, %v505_v36 }
  0xf6   : > { %v683_v11 = vpop.permute.xlu1 %682 }
  0xf7   : > { %v810_v14 = vmul.f32 %v683_v11, %v538_v44  ;;  %879 = vperm.xlu1 %1594, %v797_v10   ;;  %v842_v10 = vld [vmem:[%s1916_s26 + $0x88] sm:$0xff] }
  0xf8   : > { %v701_v12 = vpop.permute.xlu0 %700 }
  0xf9   : > { %944 = vperm.xlu0 %1593, %v810_v14   ;;  %v813_v23 = vmul.f32 %v701_v12, %v547_v46 }
  0xfa   : > { %v694_v17 = vpop.permute.xlu1 %693 }
  0xfb   : > { %949 = vperm.xlu1 %1594, %v811_v15   ;;  %v812_v26 = vmul.f32 %v694_v17, %v544_v45  ;;  %v827_v15 = vld [vmem:[%s1916_s26 + $0x10] sm:$0xff] }
  0xfc   : > { %v635_v19 = vpop.permute.xlu0 %634 }
  0xfd   : > { %874 = vperm.xlu0 %1593, %v796_v18   ;;  %v801_v28 = vmul.f32 %v635_v19, %v1857_v35  ;;  %v828_v18 = vld [vmem:[%s1916_s26 + $0x18] sm:$0xff] }
  0xfe   : > { %v628_v13 = vpop.permute.xlu1 %627 }
  0xff   : > { %889 = vperm.xlu1 %1594, %v799_v20   ;;  %v800_v30 = vmul.f32 %v628_v13, %v1861_v37 }
 0x100   : > { %v712_v22 = vpop.permute.xlu0 %711 }
 0x101   : > { %884 = vperm.xlu0 %1593, %v798_v21   ;;  %v815_v32 = vmul.f32 %v712_v22, %v553_v48  ;;  %v829_v22 = vld [vmem:[%s1916_s26 + $0x20] sm:$0xff] }
 0x102   : > { %v705_v25 = vpop.permute.xlu1 %704 }
 0x103   : > { %959 = vperm.xlu1 %1594, %v813_v23   ;;  %v814_v34 = vmul.f32 %v705_v25, %v550_v47  ;;  %v830_v25 = vld [vmem:[%s1916_s26 + $0x28] sm:$0xff] }
 0x104   : > { %v646_v27 = vpop.permute.xlu0 %645 }
 0x105   : > { %954 = vperm.xlu0 %1593, %v812_v26   ;;  %v803_v43 = vmul.f32 %v646_v27, %v1863_v38 }
 0x106   : > { %v639_v29 = vpop.permute.xlu1 %638 }
 0x107   : > { %899 = vperm.xlu1 %1594, %v801_v28   ;;  %v802_v5 = vmul.f32 %v639_v29, %v1859_v8 }
 0x108   : > { %v723_v31 = vpop.permute.xlu0 %722 }
 0x109   : > { %894 = vperm.xlu0 %1593, %v800_v30   ;;  %v817_v45 = vmul.f32 %v723_v31, %v1877_v50  ;;  %v843_v30 = vld [vmem:[%s1916_s26 + $0x90] sm:$0xff] }
 0x10a   : > { %v716_v33 = vpop.permute.xlu1 %715 }
 0x10b   : > { %969 = vperm.xlu1 %1594, %v815_v32   ;;  %v816_v46 = vmul.f32 %v716_v33, %v1875_v49  ;;  %v844_v32 = vld [vmem:[%s1916_s26 + $0x98] sm:$0xff] }
 0x10c   : > { %v657_v36 = vpop.permute.xlu0 %656 }
 0x10d   : > { %964 = vperm.xlu0 %1593, %v814_v34   ;;  %v805_v48 = vmul.f32 %v657_v36, %v1867_v39 }
 0x10e   : > { %v650_v44 = vpop.permute.xlu1 %649 }
 0x10f   : > { %909 = vperm.xlu1 %1594, %v803_v43   ;;  %v804_v38 = vmul.f32 %v650_v44, %v1865_v9 }
 0x110   : > { %v734_v35 = vpop.permute.xlu0 %733 }
 0x111   : > { %904 = vperm.xlu0 %1593, %v802_v5   ;;  %v819_v59 = vmul.f32 %v734_v35, %v1881_v52  ;;  %v831_v5 = vld [vmem:[%s1916_s26 + $0x30] sm:$0xff] }
 0x112   : > { %v727_v37 = vpop.permute.xlu1 %726 }
 0x113   : > { %979 = vperm.xlu1 %1594, %v817_v45   ;;  %v818_v60 = vmul.f32 %v727_v37, %v1879_v51  ;;  %v832_v45 = vld [vmem:[%s1916_s26 + $0x38] sm:$0xff] }
 0x114   : > { %v668_v47 = vpop.permute.xlu0 %667 }
 0x115   : > { %974 = vperm.xlu0 %1593, %v816_v46   ;;  %v807_v6 = vmul.f32 %v668_v47, %v1871_v41 }
 0x116   : > { %v661_v58 = vpop.permute.xlu1 %660 }
 0x117   : > { %919 = vperm.xlu1 %1594, %v805_v48   ;;  %v806_v49 = vmul.f32 %v661_v58, %v1869_v40  ;;  %v845_v48 = vld [vmem:[%s1916_s26 + $0xa0] sm:$0xff] }
 0x118   : > { %v745_v50 = vpop.permute.xlu0 %744 }
 0x119   : > { %914 = vperm.xlu0 %1593, %v804_v38   ;;  %v821_v61 = vmul.f32 %v745_v50, %v1885_v54  ;;  %v846_v38 = vld [vmem:[%s1916_s26 + $0xa8] sm:$0xff] }
 0x11a   : > { %v738_v8 = vpop.permute.xlu1 %737 }
 0x11b   : > { %989 = vperm.xlu1 %1594, %v819_v59   ;;  %v820_v52 = vmul.f32 %v738_v8, %v1883_v53 }
 0x11c   : > { %v756_v9 = vpop.permute.xlu0 %755 }
 0x11d   : > { %984 = vperm.xlu0 %1593, %v818_v60   ;;  %v823_v62 = vmul.f32 %v756_v9, %v1889_v56 }
 0x11e   : > { %v672_v39 = vpop.permute.xlu1 %671 }
 0x11f   : > { %929 = vperm.xlu1 %1594, %v807_v6   ;;  %v808_v63 = vmul.f32 %v672_v39, %v1873_v42  ;;  %v825_v42 = vld [vmem:[%s1916_s26] sm:$0xff]  ;;  %v834_v39 = vld [vmem:[%s1916_s26 + $0x48] sm:$0xff] }
 0x120   : > { %v833_v6 = vld [vmem:[%s1916_s26 + $0x40] sm:$0xff] }
 0x121   : > { %924 = vperm.xlu0 %1593, %v806_v49  }
 0x122   : > { %v749_v51 = vpop.permute.xlu1 %748 }
 0x123   : > { %999 = vperm.xlu1 %1594, %v821_v61   ;;  %v822_v40 = vmul.f32 %v749_v51, %v1887_v55  ;;  %v826_v55 = vld [vmem:[%s1916_s26 + $0x8] sm:$0xff]  ;;  %v847_v51 = vld [vmem:[%s1916_s26 + $0xb0] sm:$0xff] }
 0x125   : > { %994 = vperm.xlu0 %1593, %v820_v52  }
 0x126   : > { %v760_v41 = vpop.permute.xlu1 %759 }
 0x127   : > { %1009 = vperm.xlu1 %1594, %v823_v62   ;;  %v824_v54 = vmul.f32 %v760_v41, %v1891_v57  ;;  %v1162_v41 = vand.u32 127, %v223_v0 }
 0x129   : > { %934 = vperm.xlu0 %1593, %v808_v63  }
 0x12d   : > { %1004 = vperm.xlu0 %1593, %v822_v40   ;;  %v848_v40 = vld [vmem:[%s1916_s26 + $0xb8] sm:$0xff] }
 0x131   : > { %1014 = vperm.xlu0 %1593, %v824_v54  }
 0x162   : > { %v1919_v53 = vpop.permute.xlu0 %859 }
 0x163   : > { %v1017_v57 = vmul.f32 %v1919_v53, %v825_v42 }
 0x164   : > { %v1922_v56 = vpop.permute.xlu1 %864 }
 0x165   : > { %v1018_v1 = vmul.f32 %v1922_v56, %v826_v55 }
 0x167   : > { %v1926_v2 = vadd.f32 %v1018_v1, %v1017_v57  ;;  %v1167_v1 = vadd.s32 4294967288, %v1162_v41 }
 0x16a   : > { %v1928_v4 = vpop.permute.xlu1 %939 }
 0x16b   : > { %v1033_v14 = vmul.f32 %v1928_v4, %v841_v7  ;;  %v835_v7 = vld [vmem:[%s1916_s26 + $0x50] sm:$0xff] }
 0x16e   : > { %v1930_v16 = vpop.permute.xlu1 %869 }
 0x16f   : > { %v1019_v13 = vmul.f32 %v1930_v16, %v827_v15 }
 0x172   : > { %v1933_v24 = vpop.permute.xlu1 %879 }
 0x173   : > { %v1021_v28 = vmul.f32 %v1933_v24, %v829_v22  ;;  %v2024_v22 = vsub.s32 %v1167_v1, %v1671_v3 }
 0x174   : > { %v1936_v11 = vpop.permute.xlu0 %944 }
 0x175   : > { %v1034_v12 = vmul.f32 %v1936_v11, %v842_v10 }
 0x176   : > { %v1941_v17 = vpop.permute.xlu1 %949 }
 0x177   : > { %v1944_v19 = vadd.f32 %v1034_v12, %v1033_v14  ;;  %v1035_v36 = vmul.f32 %v1941_v17, %v843_v30  ;;  %v836_v12 = vld [vmem:[%s1916_s26 + $0x58] sm:$0xff] }
 0x178   : > { %v1946_v20 = vpop.permute.xlu0 %874 }
 0x179   : > { %v1020_v21 = vmul.f32 %v1946_v20, %v828_v18  ;;  %v849_v18 = vld [vmem:[%s1916_s26 + $0xc0] sm:$0xff] }
 0x17a   : > { %v1951_v23 = vpop.permute.xlu1 %889 }
 0x17b   : > { %v1954_v26 = vadd.f32 %v1020_v21, %v1019_v13  ;;  %v1023_v46 = vmul.f32 %v1951_v23, %v831_v5  ;;  %v850_v21 = vld [vmem:[%s1916_s26 + $0xc8] sm:$0xff] }
 0x17c   : > { %v1956_v27 = vpop.permute.xlu0 %884  ;;  %v838_v5 = vld [vmem:[%s1916_s26 + $0x68] sm:$0xff] }
 0x17d   : > { %v1022_v29 = vmul.f32 %v1956_v27, %v830_v25  ;;  %v2027_v25 = vsub.s32 %v1162_v41, %v1671_v3  ;;  %v1171_v3 = vrot.slane %v1922_v56, %v2024_v22 }
 0x17e   : > { %v1961_v31 = vpop.permute.xlu1 %959 }
 0x17f   : > { %v1964_v33 = vadd.f32 %v1022_v29, %v1021_v28  ;;  %v1037_v60 = vmul.f32 %v1961_v31, %v845_v48  ;;  %v1240_v56 = vrot.slane %v1928_v4, %v2027_v25 }
 0x180   : > { %v1966_v34 = vpop.permute.xlu0 %954 }
 0x181   : > { %v1036_v43 = vmul.f32 %v1966_v34, %v844_v32 }
 0x182   : > { %v1970_v44 = vpop.permute.xlu1 %899 }
 0x183   : > { %v1973_v35 = vadd.f32 %v1036_v43, %v1035_v36  ;;  %v1025_v52 = vmul.f32 %v1970_v44, %v833_v6  ;;  %v837_v43 = vld [vmem:[%s1916_s26 + $0x60] sm:$0xff]  ;;  %v1186_v6 = vrot.slane %v1933_v24, %v2027_v25  ;;  %v1195_v24 = vrot.slane %v1951_v23, %v2027_v25 }
 0x184   : > { %v1976_v37 = vpop.permute.xlu0 %894 }
 0x185   : > { %v1024_v47 = vmul.f32 %v1976_v37, %v832_v45  ;;  %v1244_v45 = vrot.slane %v1936_v11, %v2024_v22  ;;  %v1177_v11 = vrot.slane %v1930_v16, %v2027_v25 }
 0x186   : > { %v1981_v58 = vpop.permute.xlu1 %969 }
 0x187   : > { %v1984_v59 = vadd.f32 %v1024_v47, %v1023_v46  ;;  %v1039_v55 = vmul.f32 %v1981_v58, %v847_v51  ;;  %v1181_v46 = vrot.slane %v1946_v20, %v2024_v22  ;;  %v1166_v47 = vrot.slane %v1919_v53, %v2027_v25 }
 0x188   : > { %v1986_v8 = vpop.permute.xlu0 %964  ;;  %v1199_v53 = vrot.slane %v1976_v37, %v2024_v22  ;;  %v1245_v4 = vsel %vm1172_vm0, %v1244_v45, %v1240_v56  ;;  %v853_v56 = vld [vmem:[%s1916_s26 + $0xe0] sm:$0xff] }
 0x189   : > { %v1038_v50 = vmul.f32 %v1986_v8, %v846_v38  ;;  %v1190_v38 = vrot.slane %v1956_v27, %v2024_v22  ;;  %v852_v27 = vld [vmem:[%s1916_s26 + $0xd8] sm:$0xff] }
 0x18a   : > { %v1991_v49 = vpop.permute.xlu1 %909 }
 0x18b   : > { %v1994_v61 = vadd.f32 %v1038_v50, %v1037_v60  ;;  %v1027_v0 = vmul.f32 %v1991_v49, %v835_v7  ;;  %v1191_v37 = vsel %vm1172_vm0, %v1190_v38, %v1186_v6 }
 0x18c   : > { %v1996_v9 = vpop.permute.xlu0 %904 }
 0x18d   : > { %v1026_v62 = vmul.f32 %v1996_v9, %v834_v39  ;;  %v851_v39 = vld [vmem:[%s1916_s26 + $0xd0] sm:$0xff]  ;;  %v1208_v41 = vrot.slane %v1996_v9, %v2024_v22 }
 0x18e   : > { %v2001_v63 = vpop.permute.xlu1 %979 }
 0x18f   : > { %v2005_v54 = vadd.f32 %v1026_v62, %v1025_v52  ;;  %v1041_v30 = vmul.f32 %v2001_v63, %v849_v18  ;;  %v1173_v52 = vsel %vm1172_vm0, %v1171_v3, %v1166_v47  ;;  %v1182_v62 = vsel %vm1172_vm0, %v1181_v46, %v1177_v11  ;;  %v839_v18 = vld [vmem:[%s1916_s26 + $0x70] sm:$0xff] }
 0x190   : > { %v2007_v42 = vpop.permute.xlu0 %974  ;;  %v1310_v23 = vsel %vm1309_vm3, %v1182_v62, %v1173_v52 }
 0x191   : > { %v1040_v57 = vmul.f32 %v2007_v42, %v848_v40  ;;  %v1253_v40 = vrot.slane %v1966_v34, %v2024_v22  ;;  %v1200_v34 = vsel %vm1172_vm0, %v1199_v53, %v1195_v24  ;;  %v1271_v38 = vrot.slane %v2007_v42, %v2024_v22 }
 0x192   : > { %v2014_v14 = vpop.permute.xlu1 %919 }
 0x193   : > { %v2012_v10 = vadd.f32 %v1040_v57, %v1039_v55  ;;  %v1029_v50 = vmul.f32 %v2014_v14, %v837_v43  ;;  %v1249_v57 = vrot.slane %v1941_v17, %v2027_v25  ;;  %v1312_v17 = vsel %vm1311_vm4, %v1191_v37, %v1310_v23 }
 0x194   : > { %v2017_v15 = vpop.permute.xlu0 %914 }
 0x195   : > { %v1028_v13 = vmul.f32 %v2017_v15, %v836_v12  ;;  %v1217_v1 = vrot.slane %v2017_v15, %v2024_v22  ;;  %v1258_v15 = vrot.slane %v1961_v31, %v2027_v25  ;;  %v1314_v31 = vsel %vm1313_vm5, %v1200_v34, %v1312_v17 }
 0x196   : > { %v2034_v32 = vpop.permute.xlu1 %989 }
 0x197   : > { %v2029_v28 = vadd.f32 %v1028_v13, %v1027_v0  ;;  %v1043_v7 = vmul.f32 %v2034_v32, %v851_v39  ;;  %v1204_v0 = vrot.slane %v1970_v44, %v2027_v25  ;;  %v840_v13 = vld [vmem:[%s1916_s26 + $0x78] sm:$0xff]  ;;  %v1254_v44 = vsel %vm1172_vm0, %v1253_v40, %v1249_v57 }
 0x198   : > { %v2031_v29 = vpop.permute.xlu0 %984  ;;  %v1285_v40 = vrot.slane %v2034_v32, %v2027_v25  ;;  %v1323_v57 = vsel %vm1309_vm3, %v1254_v44, %v1245_v4 }
 0x199   : > { %v1042_v36 = vmul.f32 %v2031_v29, %v850_v21  ;;  %v1213_v21 = vrot.slane %v1991_v49, %v2027_v25  ;;  %v1209_v43 = vsel %vm1172_vm0, %v1208_v41, %v1204_v0  ;;  %v1280_v6 = vrot.slane %v2031_v29, %v2024_v22 }
 0x19a   : > { %v930_v16 = vpop.permute.xlu1 %929 }
 0x19b   : > { %v2045_v48 = vadd.f32 %v1042_v36, %v1041_v30  ;;  %v1262_v36 = vrot.slane %v1986_v8, %v2024_v22  ;;  %v1218_v45 = vsel %vm1172_vm0, %v1217_v1, %v1213_v21  ;;  %v1031_v46 = vmul.f32 %v930_v16, %v839_v18 }
 0x19c   : > { %v925_v60 = vpop.permute.xlu0 %924 }
 0x19d   : > { %v1030_v20 = vmul.f32 %v925_v60, %v838_v5  ;;  %v1226_v9 = vrot.slane %v925_v60, %v2024_v22  ;;  %v1222_v5 = vrot.slane %v2014_v14, %v2027_v25  ;;  %v1231_v60 = vrot.slane %v930_v16, %v2027_v25 }
 0x19e   : > { %v1000_v49 = vpop.permute.xlu1 %999  ;;  %v1267_v14 = vrot.slane %v1981_v58, %v2027_v25  ;;  %v1263_v42 = vsel %vm1172_vm0, %v1262_v36, %v1258_v15  ;;  %v1276_v16 = vrot.slane %v2001_v63, %v2027_v25 }
 0x19f   : > { %v2065_v51 = vadd.f32 %v1030_v20, %v1029_v50  ;;  %v1227_v8 = vsel %vm1172_vm0, %v1226_v9, %v1222_v5  ;;  %v854_v50 = vld [vmem:[%s1916_s26 + $0xe8] sm:$0xff]  ;;  %v1316_v20 = vsel %vm1315_vm6, %v1209_v43, %v1314_v31  ;;  %v1045_v58 = vmul.f32 %v1000_v49, %v853_v56 }
 0x1a0   : > { %v995_v55 = vpop.permute.xlu0 %994  ;;  %v1318_v62 = vsel %vm1317_vm7, %v1218_v45, %v1316_v20  ;;  %v1272_v29 = vsel %vm1172_vm0, %v1271_v38, %v1267_v14  ;;  %v1281_v1 = vsel %vm1172_vm0, %v1280_v6, %v1276_v16  ;;  %v1324_v23 = vsel %vm1311_vm4, %v1263_v42, %v1323_v57 }
 0x1a1   : > { %v1044_v12 = vmul.f32 %v995_v55, %v852_v27  ;;  %v1289_v39 = vrot.slane %v995_v55, %v2024_v22  ;;  %v1320_v37 = vsel %vm1319_vm8, %v1227_v8, %v1318_v62  ;;  %v1325_v18 = vsel %vm1313_vm5, %v1272_v29, %v1324_v23 }
 0x1a2   : > { %v2130_v63 = vpop.permute.xlu1 %1009  ;;  %v1326_v17 = vsel %vm1315_vm6, %v1281_v1, %v1325_v18  ;;  %v1050_v5 = vrot.slane %v1926_v2, 4  ;;  %v1113_v31 = vrot.slane %v1973_v35, 4  ;;  %v1120_v6 = vrot.slane %v1994_v61, 4 }
 0x1a3   : > { %v2091_v30 = vadd.f32 %v1044_v12, %v1043_v7  ;;  %v1294_v7 = vrot.slane %v1000_v49, %v2027_v25  ;;  %v1290_v0 = vsel %vm1172_vm0, %v1289_v39, %v1285_v40  ;;  %v1303_v9 = vrot.slane %v2130_v63, %v2027_v25 }
 0x1a4   : > { %v935_v3 = vpop.permute.xlu0 %934  ;;  %v1327_v15 = vsel %vm1317_vm7, %v1290_v0, %v1326_v17  ;;  %v1106_v25 = vrot.slane %v1944_v19, 4  ;;  %v1051_v45 = vadd.f32 %v1050_v5, %v1926_v2  ;;  %v1114_v38 = vadd.f32 %v1113_v31, %v1973_v35  ;;  %v855_v17 = vld [vmem:[%s1916_s26 + $0xf0] sm:$0xff] }
 0x1a5   : > { %v1032_v47 = vmul.f32 %v935_v3, %v840_v13  ;;  %v1235_v11 = vrot.slane %v935_v3, %v2024_v22  ;;  %v1057_v3 = vrot.slane %v1954_v26, 4  ;;  %v1078_v35 = vrot.slane %v2005_v54, 4 }
 0x1a6   : > { %v1052_v8 = vrot.slane %v1051_v45, 2  ;;  %v1115_v14 = vrot.slane %v1114_v38, 2  ;;  %v1085_v40 = vrot.slane %v2029_v28, 4  ;;  %v1127_v1 = vrot.slane %v2012_v10, 4 }
 0x1a7   : > { %v2113_v53 = vadd.f32 %v1032_v47, %v1031_v46  ;;  %v1236_v52 = vsel %vm1172_vm0, %v1235_v11, %v1231_v60  ;;  %v1107_v46 = vadd.f32 %v1106_v25, %v1944_v19  ;;  %v1058_v49 = vadd.f32 %v1057_v3, %v1954_v26 }
 0x1a8   : > { %v1005_v27 = vpop.permute.xlu0 %1004  ;;  %v1322_v55 = vsel %vm1321_vm9, %v1236_v52, %v1320_v37  ;;  %v1071_v60 = vrot.slane %v1984_v59, 4  ;;  %v1053_v2 = vadd.f32 %v1052_v8, %v1051_v45  ;;  %v1116_v26 = vadd.f32 %v1115_v14, %v1114_v38 }
 0x1a9   : > { %v1046_v24 = vmul.f32 %v1005_v27, %v854_v50  ;;  %v1298_v41 = vrot.slane %v1005_v27, %v2024_v22  ;;  %v1333_v32 = vsel %vm1332_vm10, %v1322_v55, 0.0  ;;  %v1108_v56 = vrot.slane %v1107_v46, 2 }
 0x1aa   : > { %1334 = vadd.xlane.f32.xlu1 %v1333_v32  ;;  %v1059_v11 = vrot.slane %v1058_v49, 2  ;;  %v1072_v20 = vadd.f32 %v1071_v60, %v1984_v59  ;;  %v1054_v52 = vrot.slane %v1053_v2, 1  ;;  %v1079_v29 = vadd.f32 %v1078_v35, %v2005_v54 }
 0x1ab   : > { %v2132_v12 = vadd.f32 %v1046_v24, %v1045_v58  ;;  %v1299_v4 = vsel %vm1172_vm0, %v1298_v41, %v1294_v7  ;;  %v1109_v42 = vadd.f32 %v1108_v56, %v1107_v46  ;;  %v1117_v24 = vrot.slane %v1116_v26, 1  ;;  %v856_v7 = vld [vmem:[%s1916_s26 + $0xf8] sm:$0xff] }
 0x1ac   : > { %v2137_v34 = vpop.permute.xlu0 %1014  ;;  %v1328_v44 = vsel %vm1319_vm8, %v1299_v4, %v1327_v15  ;;  %v1060_v19 = vadd.f32 %v1059_v11, %v1058_v49  ;;  %v1073_v27 = vrot.slane %v1072_v20, 2  ;;  %v2170_v41 = vadd.f32 %v1054_v52, %v1053_v2 }
 0x1ad   : > { %v1307_v13 = vrot.slane %v2137_v34, %v2024_v22  ;;  %v1064_v22 = vrot.slane %v1964_v33, 4  ;;  %v1110_v62 = vrot.slane %v1109_v42, 1  ;;  %v2180_v0 = vadd.f32 %v1117_v24, %v1116_v26 }
 0x1ae   : > { %v1061_v16 = vrot.slane %v1060_v19, 1  ;;  %v2166_v37 = vadd.f32 %v1073_v27, %v1072_v20  ;;  %v1092_v54 = vrot.slane %v2065_v51, 4  ;;  %v1099_v15 = vrot.slane %v2113_v53, 4 }
 0x1af   : > { %v1308_v21 = vsel %vm1172_vm0, %v1307_v13, %v1303_v9  ;;  %v1065_v47 = vadd.f32 %v1064_v22, %v1964_v33  ;;  %v1121_v33 = vadd.f32 %v1120_v6, %v1994_v61  ;;  %v2172_v55 = vadd.f32 %v1110_v62, %v1109_v42 }
 0x1b0   : > { %v1329_v36 = vsel %vm1321_vm9, %v1308_v21, %v1328_v44  ;;  %v2174_v61 = vadd.f32 %v1061_v16, %v1060_v19  ;;  %v1075_v32 = vrot.slane %v2166_v37, 1  ;;  %v1080_v9 = vrot.slane %v1079_v29, 2 }
 0x1b1   : > { %v1336_v43 = vsel %vm1332_vm10, %v1329_v36, 0.0  ;;  %v1066_v50 = vrot.slane %v1065_v47, 2  ;;  %v1122_v59 = vrot.slane %v1121_v33, 2  ;;  %v1086_v13 = vadd.f32 %v1085_v40, %v2029_v28 }
 0x1b2   : > { %1337 = vadd.xlane.f32.xlu0 %v1336_v43  ;;  %v1048_v21 = vmul.f32 %v2137_v34, %v856_v7  ;;  %v1128_v5 = vadd.f32 %v1127_v1, %v2012_v10  ;;  %v1134_v25 = vrot.slane %v2045_v48, 4  ;;  %v1093_v22 = vadd.f32 %v1092_v54, %v2065_v51 }
 0x1b3   : > { %v1067_v39 = vadd.f32 %v1066_v50, %v1065_v47  ;;  %v2184_v4 = vadd.f32 %v1122_v59, %v1121_v33  ;;  %v1047_v31 = vmul.f32 %v2130_v63, %v855_v17  ;;  %v1087_v28 = vrot.slane %v1086_v13, 2 }
 0x1b4   : > { %v1100_v46 = vadd.f32 %v1099_v15, %v2113_v53  ;;  %v1081_v60 = vadd.f32 %v1080_v9, %v1079_v29  ;;  %v1135_v8 = vadd.f32 %v1134_v25, %v2045_v48  ;;  %v1141_v56 = vrot.slane %v2091_v30, 4 }
 0x1b5   : > { %v1068_v58 = vrot.slane %v1067_v39, 1  ;;  %v1154_v47 = vadd.f32 %v1048_v21, %v1047_v31  ;;  %v1129_v51 = vrot.slane %v1128_v5, 2  ;;  %v1094_v63 = vrot.slane %v1093_v22, 2 }
 0x1b6   : > { %v1101_v50 = vrot.slane %v1100_v46, 2  ;;  %v1148_v53 = vrot.slane %v2132_v12, 4  ;;  %v1088_v20 = vadd.f32 %v1087_v28, %v1086_v13  ;;  %v1136_v42 = vrot.slane %v1135_v8, 2 }
 0x1b7   : > { %v2176_v57 = vadd.f32 %v1068_v58, %v1067_v39  ;;  %v1155_v6 = vrot.slane %v1154_v47, 4  ;;  %v1142_v19 = vadd.f32 %v1141_v56, %v2091_v30  ;;  %v1082_v39 = vrot.slane %v1081_v60, 1 }
 0x1b8   : > { %v1095_v26 = vadd.f32 %v1094_v63, %v1093_v22  ;;  %v1102_v33 = vadd.f32 %v1101_v50, %v1100_v46  ;;  %v1149_v35 = vadd.f32 %v1148_v53, %v2132_v12  ;;  %v1130_v62 = vadd.f32 %v1129_v51, %v1128_v5 }
 0x1b9   : > { %v1156_v16 = vadd.f32 %v1155_v6, %v1154_v47  ;;  %v1089_v24 = vrot.slane %v1088_v20, 1  ;;  %v1137_v59 = vadd.f32 %v1136_v42, %v1135_v8  ;;  %v1143_v29 = vrot.slane %v1142_v19, 2 }
 0x1ba   : > { %v1076_v40 = vadd.f32 %v1075_v32, %v2166_v37  ;;  %v1124_v1 = vrot.slane %v2184_v4, 1  ;;  %v1096_v7 = vrot.slane %v1095_v26, 1  ;;  %v1103_v54 = vrot.slane %v1102_v33, 1 }
 0x1bb   : > { %v1131_v13 = vrot.slane %v1130_v62, 1  ;;  %v1157_v17 = vrot.slane %v1156_v16, 2 }
 0x1bc   : > { %v1097_v5 = vadd.f32 %v1096_v7, %v1095_v26  ;;  %v1125_v63 = vadd.f32 %v1124_v1, %v2184_v4 }
 0x233   : > { %v1335_v23 = vpop.xlane.xlu1 %1334 }
 0x234   : > { %v1339_v18 = vadd.f32 1e-06, %v1335_v23  ;;  %v1083_v23 = vadd.f32 %v1082_v39, %v1081_v60 }
 0x236   : > { %v1343_v44 = vrot.slane %v1339_v18, 1  ;;  %v1344_v36 = vrot.slane %v1339_v18, 2  ;;  %v1345_v43 = vrot.slane %v1339_v18, 3  ;;  %v1346_v3 = vrot.slane %v1339_v18, 4 }
 0x237   : > { %1597 = vrcp.f32 %v1339_v18  ;;  %v1347_v45 = vrot.slane %v1339_v18, 5  ;;  %v1348_v49 = vrot.slane %v1339_v18, 6  ;;  %v1349_v38 = vrot.slane %v1339_v18, 7 }
 0x238   : > { %1599 = vrcp.f32 %v1343_v44  ;;  %v1150_v18 = vrot.slane %v1149_v35, 2  ;;  %v1090_v44 = vadd.f32 %v1089_v24, %v1088_v20  ;;  %v1132_v20 = vadd.f32 %v1131_v13, %v1130_v62 }
 0x239   : > { %1601 = vrcp.f32 %v1344_v36  ;;  %v1138_v36 = vrot.slane %v1137_v59, 1 }
 0x23a   : > { %1603 = vrcp.f32 %v1345_v43  ;;  %v1144_v43 = vadd.f32 %v1143_v29, %v1142_v19  ;;  %v1151_v28 = vadd.f32 %v1150_v18, %v1149_v35 }
 0x23b   : > { %v1338_v34 = vpop.xlane.xlu0 %1337  ;;  %1605 = vrcp.f32 %v1346_v3 }
 0x23c   : > { %v1340_v10 = vadd.f32 1e-06, %v1338_v34  ;;  %1607 = vrcp.f32 %v1347_v45  ;;  %v1104_v45 = vadd.f32 %v1103_v54, %v1102_v33  ;;  %v1152_v6 = vrot.slane %v1151_v28, 1 }
 0x23d   : > { %1609 = vrcp.f32 %v1348_v49  ;;  %v1139_v33 = vadd.f32 %v1138_v36, %v1137_v59 }
 0x23e   : > { %v1350_v11 = vrot.slane %v1340_v10, 1  ;;  %v1351_v14 = vrot.slane %v1340_v10, 2  ;;  %1611 = vrcp.f32 %v1349_v38  ;;  %v1352_v2 = vrot.slane %v1340_v10, 3 }
 0x23f   : > { %v1353_v48 = vrot.slane %v1340_v10, 4  ;;  %1613 = vrcp.f32 %v1340_v10  ;;  %v1354_v27 = vrot.slane %v1340_v10, 5  ;;  %v1355_v52 = vrot.slane %v1340_v10, 6 }
 0x240   : > { %1615 = vrcp.f32 %v1350_v11  ;;  %v1356_v58 = vrot.slane %v1340_v10, 7  ;;  %v1153_v1 = vadd.f32 %v1152_v6, %v1151_v28 }
 0x241   : > { %1617 = vrcp.f32 %v1351_v14 }
 0x242   : > { %1619 = vrcp.f32 %v1352_v2 }
 0x243   : > { %1621 = vrcp.f32 %v1353_v48 }
 0x244   : > { %v1598_v30 = vpop.eup %1597  ;;  %1623 = vrcp.f32 %v1354_v27 }
 0x245   : > { %v1600_v12 = vpop.eup %1599  ;;  %1625 = vrcp.f32 %v1355_v52  ;;  %v1374_v25 = vmul.f32 %v1598_v30, %v2170_v41 }
 0x246   : > { %v1602_v9 = vpop.eup %1601  ;;  %v1376_v15 = vmul.f32 %v1600_v12, %v2174_v61  ;;  %1627 = vrcp.f32 %v1356_v58  ;;  %v1158_v61 = vadd.f32 %v1157_v17, %v1156_v16 }
 0x247   : > { %v1604_v21 = vpop.eup %1603  ;;  %v1378_v37 = vmul.f32 %v1602_v9, %v2176_v57  ;;  %v1145_v57 = vrot.slane %v1144_v43, 1 }
 0x248   : > { %v1606_v32 = vpop.eup %1605  ;;  %v1380_v3 = vmul.f32 %v1604_v21, %v1076_v40  ;;  %v1421_v22 = vrot.slane %v1376_v15, 7  ;;  %v1159_v48 = vrot.slane %v1158_v61, 1 }
 0x249   : > { %v1608_v31 = vpop.eup %1607  ;;  %v1382_v46 = vmul.f32 %v1606_v32, %v1083_v23  ;;  %v1423_v49 = vrot.slane %v1378_v37, 6  ;;  %v1146_v35 = vadd.f32 %v1145_v57, %v1144_v43 }
 0x24a   : > { %v1610_v34 = vpop.eup %1609  ;;  %v1384_v47 = vmul.f32 %v1608_v31, %v1090_v44  ;;  %v1422_v38 = vsel %vm1309_vm3, %v1421_v22, %v1374_v25  ;;  %v1425_v10 = vrot.slane %v1380_v3, 5 }
 0x24b   : > { %v1612_v60 = vpop.eup %1611  ;;  %v1386_v8 = vmul.f32 %v1610_v34, %v1097_v5  ;;  %v1424_v56 = vsel %vm1311_vm4, %v1423_v49, %v1422_v38  ;;  %v1427_v41 = vrot.slane %v1382_v46, 4 }
 0x24c   : > { %v1614_v51 = vpop.eup %1613  ;;  %v1388_v11 = vmul.f32 %v1612_v60, %v1104_v45  ;;  %v1426_v50 = vsel %vm1313_vm5, %v1425_v10, %v1424_v56  ;;  %v1429_v53 = vrot.slane %v1384_v47, 3 }
 0x24d   : > { %v1616_v14 = vpop.eup %1615  ;;  %v1428_v2 = vsel %vm1315_vm6, %v1427_v41, %v1426_v50  ;;  %v1431_v42 = vrot.slane %v1386_v8, 2  ;;  %v1390_v24 = vmul.f32 %v1614_v51, %v2172_v55 }
 0x24e   : > { %v1618_v19 = vpop.eup %1617  ;;  %v1430_v4 = vsel %vm1317_vm7, %v1429_v53, %v1428_v2  ;;  %v1433_v39 = vrot.slane %v1388_v11, 1  ;;  %v1392_v26 = vmul.f32 %v1616_v14, %v2180_v0  ;;  %v1160_v0 = vadd.f32 %v1159_v48, %v1158_v61 }
 0x24f   : > { %v1620_v27 = vpop.eup %1619  ;;  %v1432_v52 = vsel %vm1319_vm8, %v1431_v42, %v1430_v4  ;;  %v1394_v62 = vmul.f32 %v1618_v19, %v1125_v63 }
 0x250   : > { %v1622_v16 = vpop.eup %1621  ;;  %v1434_v58 = vsel %vm1321_vm9, %v1433_v39, %v1432_v52  ;;  %v1396_v29 = vmul.f32 %v1620_v27, %v1132_v20  ;;  %v1435_v30 = vrot.slane %v1392_v26, 7 }
 0x251   : > { %v1624_v40 = vpop.eup %1623  ;;  %1451 = vst [vmem:[%s2216_s29] sm:$0xff] %v1434_v58  ;;  %v1398_v7 = vmul.f32 %v1622_v16, %v1139_v33  ;;  %v1437_v12 = vrot.slane %v1394_v62, 6 }
 0x252   : > { %v1626_v23 = vpop.eup %1625  ;;  %v1400_v54 = vmul.f32 %v1624_v40, %v1146_v35  ;;  %v1436_v59 = vsel %vm1309_vm3, %v1435_v30, %v1390_v24  ;;  %v1439_v18 = vrot.slane %v1396_v29, 5 }
 0x253   : > { %v1628_v9 = vpop.eup %1627  ;;  %v1402_v13 = vmul.f32 %v1626_v23, %v1153_v1  ;;  %v1438_v17 = vsel %vm1311_vm4, %v1437_v12, %v1436_v59  ;;  %v1441_v15 = vrot.slane %v1398_v7, 4 }
 0x254   : > { %v1404_v55 = vmul.f32 %v1628_v9, %v1160_v0  ;;  %v1440_v21 = vsel %vm1313_vm5, %v1439_v18, %v1438_v17  ;;  %v1443_v44 = vrot.slane %v1400_v54, 3 }
 0x255   : > { %v1442_v36 = vsel %vm1315_vm6, %v1441_v15, %v1440_v21  ;;  %v1445_v43 = vrot.slane %v1402_v13, 2 }
 0x256   : > { %v1444_v37 = vsel %vm1317_vm7, %v1443_v44, %v1442_v36  ;;  %v1447_v32 = vrot.slane %v1404_v55, 1 }
 0x257   : > { %v1446_v5 = vsel %vm1319_vm8, %v1445_v43, %v1444_v37 }
 0x258   : > { %v1448_v25 = vsel %vm1321_vm9, %v1447_v32, %v1446_v5 }
 0x259   : > { %1452 = vst [vmem:[%s2216_s29 + $0x8] sm:$0xff] %v1448_v25 }
 0x25a PF: > { %s13_s12 = sadd.s32 1, %s1635_s12  }
 0x25b   : > { %p10_p5 = scmp.ge.s32.totalorder %s13_s12, 5  }
 0x25d   :  { %12 = sbr.rel (!%p10_p5) target bundleno = 1 (0x1), region = 68 }

</bundles_post_ra>
